<compile_context>
chip_gen: v6e
topology: v6e:2x2x1
jax: 0.10.0
libtpu: 0.0.40
codegen_flags: <defaults>
</compile_context>

<pallas_src>
import jax
import jax.numpy as jnp
from jax.experimental import pallas as pl
from jax.experimental.pallas import tpu as pltpu


def _ffn_kernel(x_ref, w1_ref, b1_ref, w2_ref, b2_ref, o_ref):
    # x_ref:  (tm, C)  bf16  row tile, resident across the h axis
    # w1_ref: (C, th)  bf16  H-chunk of W1 (resident when th == H)
    # b1_ref: (1, th)  f32
    # w2_ref: (th, C)  bf16  H-chunk of W2 (resident when th == H)
    # b2_ref: (1, C)   f32
    # o_ref:  (tm, C)  f32   resident across the h axis == the accumulator
    h_idx = pl.program_id(1)

    # First matmul on this H-chunk: (tm, C) @ (C, th) -> (tm, th), f32 accumulate.
    h = jnp.dot(x_ref[...], w1_ref[...], preferred_element_type=jnp.float32)
    # Bias + ReLU per H-chunk is exact: elementwise over hidden columns before
    # the chunked contraction over H.
    h = jnp.maximum(h + b1_ref[...], 0.0)

    # Second matmul: contract this H-chunk back to (tm, C).
    part = jnp.dot(h.astype(jnp.bfloat16), w2_ref[...],
                   preferred_element_type=jnp.float32)

    # Accumulate directly into the resident output block.  b2 is folded into the
    # first step, so the resident-weights path (single h step) is one store.
    @pl.when(h_idx == 0)
    def _():
        o_ref[...] = part + b2_ref[...]

    @pl.when(h_idx > 0)
    def _():
        o_ref[...] += part


def _round_up(x, m):
    return (x + m - 1) // m * m


def _vmem_budget_bytes():
    """~75% of physical VMEM: 96 MiB on v5e/v6e, 48 MiB (headroom) on v7x."""
    try:
        cap = pltpu.get_tpu_info().vmem_capacity_bytes
    except Exception:
        cap = 64 * 1024 * 1024  # conservative fallback (v7x-sized)
    return max(32 * 1024 * 1024, (cap * 3) // 4)


def _vmem_working_set(tm, th, C):
    """Rough upper bound on kernel VMEM use (double-buffer factor on operands)."""
    return (2 * tm * C * 2          # x tile, bf16
            + 2 * C * th * 2        # W1 chunk, bf16
            + 2 * th * C * 2        # W2 chunk, bf16
            + 2 * th * 4            # b1 chunk
            + 2 * C * 4             # b2
            + 2 * tm * C * 4        # output tile, f32
            + tm * th * (4 + 2)     # hidden intermediate (f32) + bf16 copy
            + tm * C * 4)           # second-matmul partial before accumulate


def _select_tiles(M, C, H, vmem_budget):
    M8 = _round_up(M, 8)
    # Row tile: biggest candidate whose padding waste stays below ~25%.
    tm = 8
    for cand in (512, 256, 128, 64, 32, 16, 8):
        cand = min(cand, M8)
        if _round_up(M, cand) <= (M8 * 5) // 4:
            tm = cand
            break
    # Hidden tile: prefer th == H (weights resident, single reduction step),
    # otherwise the largest lane-aligned divisor of H that fits the budget.
    th = None
    for cand in (H, 4096, 2048, 1024, 512, 256, 128):
        if cand > H or cand < 128 or H % cand:
            continue
        if _vmem_working_set(tm, cand, C) <= vmem_budget:
            th = cand
            break
    if th is None:
        th = 128
        while tm > 8 and _vmem_working_set(tm, th, C) > vmem_budget:
            tm = max(8, _round_up(tm // 2, 8))
    return tm, th


def feed_forward(x, w1, b1, w2, b2, *, tm=None, th=None):
    """Fused FFN forward (Dropout == identity / inference mode).

    x: (B, T, C).  w1: (C, H), b1: (H,), w2: (H, C), b2: (C,) with H = 4*C.
    Weights are stored (in, out), i.e. y = x @ W + b (== PyTorch x @ W.T + b).
    """
    B, T, C = x.shape
    H = w1.shape[1]
    M = B * T

    assert C % 128 == 0, "embed dim must be a multiple of 128 (lane width)"
    assert w1.shape == (C, H) and w2.shape == (H, C)

    budget = _vmem_budget_bytes()
    auto_tm, auto_th = _select_tiles(M, C, H, budget)
    tm = auto_tm if tm is None else min(tm, _round_up(M, 8))
    th = auto_th if th is None else th
    assert tm % 8 == 0, "row tile must be a multiple of 8 (sublane width)"
    assert th % 128 == 0 and H % th == 0, "hidden tile must divide H, mult of 128"

    M_pad = _round_up(M, tm)

    # Hoisted f32->bf16 cast (halves x HBM traffic and the resident x tile).
    x2d = x.reshape(M, C).astype(jnp.bfloat16)
    if M_pad != M:
        x2d = jnp.pad(x2d, ((0, M_pad - M), (0, 0)))

    # bf16 weights: MXU-native on every generation, halves weight HBM/VMEM.
    # (v7x-only fp8 weight path intentionally not taken: not portable to v5e/v6e.)
    w1_bf = w1.astype(jnp.bfloat16)
    w2_bf = w2.astype(jnp.bfloat16)
    b1_2d = b1.reshape(1, H).astype(jnp.float32)
    b2_2d = b2.reshape(1, C).astype(jnp.float32)

    m_tiles = M_pad // tm
    h_tiles = H // th
    grid = (m_tiles, h_tiles)  # reduction axis (H) last

    # Weights are fetched once when resident (h_tiles == 1), else once per row tile.
    weight_reads = 1 if h_tiles == 1 else m_tiles
    cost = pl.CostEstimate(
        flops=4 * M_pad * C * H,  # two matmuls: 2*M*C*H each
        transcendentals=0,
        bytes_accessed=(M_pad * C * 2                      # x (bf16)
                        + weight_reads * (2 * C * H * 2)   # W1 + W2 (bf16)
                        + H * 4 + C * 4                    # biases
                        + M_pad * C * 4),                  # output (f32)
    )

    out2d = pl.pallas_call(
        _ffn_kernel,
        out_shape=jax.ShapeDtypeStruct((M_pad, C), jnp.float32),
        grid_spec=pltpu.PrefetchScalarGridSpec(
            num_scalar_prefetch=0,
            grid=grid,
            in_specs=[
                pl.BlockSpec((tm, C), lambda i, h: (i, 0)),   # x rows (resident over h)
                pl.BlockSpec((C, th), lambda i, h: (0, h)),   # W1 chunk (const if th==H)
                pl.BlockSpec((1, th), lambda i, h: (0, h)),   # b1 chunk
                pl.BlockSpec((th, C), lambda i, h: (h, 0)),   # W2 chunk (const if th==H)
                pl.BlockSpec((1, C), lambda i, h: (0, 0)),    # b2 (constant)
            ],
            out_specs=pl.BlockSpec((tm, C), lambda i, h: (i, 0)),
        ),
        compiler_params=pltpu.CompilerParams(
            dimension_semantics=("parallel", "arbitrary"),
            vmem_limit_bytes=budget,
        ),
        cost_estimate=cost,
    )(x2d, w1_bf, b1_2d, w2_bf, b2_2d)

    return out2d[:M].reshape(B, T, C).astype(x.dtype)


def _reference_f32(x, w1, b1, w2, b2):
    h = jnp.maximum(x @ w1 + b1, 0.0)
    return h @ w2 + b2


if __name__ == "__main__":
    embed_dim = 128
    hidden = 4 * embed_dim
    B, T = 2, 8

    key = jax.random.PRNGKey(0)
    kx, k1, k2, k3, k4 = jax.random.split(key, 5)

    x = jax.random.normal(kx, (B, T, embed_dim), dtype=jnp.float32)
    # Deterministic parameter init (uniform, roughly PyTorch-Linear-like scale).
    w1 = jax.random.uniform(k1, (embed_dim, hidden), jnp.float32,
                            -1.0 / embed_dim ** 0.5, 1.0 / embed_dim ** 0.5)
    b1 = jax.random.uniform(k2, (hidden,), jnp.float32,
                            -1.0 / embed_dim ** 0.5, 1.0 / embed_dim ** 0.5)
    w2 = jax.random.uniform(k3, (hidden, embed_dim), jnp.float32,
                            -1.0 / hidden ** 0.5, 1.0 / hidden ** 0.5)
    b2 = jax.random.uniform(k4, (embed_dim,), jnp.float32,
                            -1.0 / hidden ** 0.5, 1.0 / hidden ** 0.5)

    ref = _reference_f32(x, w1, b1, w2, b2)

    # 1) Auto-tiled run: weights fit in VMEM -> resident path (th == H, 1 h step).
    out = jax.block_until_ready(feed_forward(x, w1, b1, w2, b2))
    assert out.shape == (B, T, embed_dim)
    # bf16 matmul operands (f32 accumulation): loosened tolerance vs f32 reference.
    assert jnp.allclose(out, ref, atol=5e-2, rtol=5e-2), "mismatch (resident path)"

    # 2) Forced th=256: exercises the H-reduction accumulation across 2 h steps.
    out_t = jax.block_until_ready(feed_forward(x, w1, b1, w2, b2, th=256))
    assert jnp.allclose(out_t, ref, atol=5e-2, rtol=5e-2), "mismatch (tiled H path)"

    # 3) Ragged-row path: B*T not a multiple of 8 exercises the padding logic.
    x2 = jax.random.normal(jax.random.PRNGKey(1), (1, 5, embed_dim), jnp.float32)
    out2 = jax.block_until_ready(feed_forward(x2, w1, b1, w2, b2))
    ref2 = _reference_f32(x2, w1, b1, w2, b2)
    assert out2.shape == (1, 5, embed_dim)
    assert jnp.allclose(out2, ref2, atol=5e-2, rtol=5e-2), "mismatch (ragged M)"

    print("KERNEL_OK")
</pallas_src>

<mosaic_0001>
module attributes {stable_mosaic.version = 11 : i64} {
  func.func @_ffn_kernel(%arg0: i32, %arg1: i32, %arg2: memref<16x128xbf16, #tpu.memory_space<vmem>>, %arg3: memref<128x512xbf16, #tpu.memory_space<vmem>>, %arg4: memref<1x512xf32, #tpu.memory_space<vmem>>, %arg5: memref<512x128xbf16, #tpu.memory_space<vmem>>, %arg6: memref<1x128xf32, #tpu.memory_space<vmem>>, %arg7: memref<16x128xf32, #tpu.memory_space<vmem>>) attributes {dimension_semantics = [#tpu.dimension_semantics<parallel>, #tpu.dimension_semantics<arbitrary>], iteration_bounds = array<i64: 1, 1>, scalar_prefetch = 0 : i64, scratch_operands = 0 : i64, tpu.core_type = #tpu.core_type<tc>, window_params = [{transform_indices = @transform_0, window_bounds = array<i64: 16, 128>}, {transform_indices = @transform_1, window_bounds = array<i64: 128, 512>}, {transform_indices = @transform_2, window_bounds = array<i64: 1, 512>}, {transform_indices = @transform_3, window_bounds = array<i64: 512, 128>}, {pipeline_mode = #tpu.pipeline_mode<synchronous>, transform_indices = @transform_4, window_bounds = array<i64: 1, 128>}, {transform_indices = @transform_5, window_bounds = array<i64: 16, 128>}]} {
    %c0 = arith.constant 0 : index
    %c0_0 = arith.constant 0 : index
    %0 = vector.load %arg2[%c0, %c0_0] : memref<16x128xbf16, #tpu.memory_space<vmem>>, vector<16x128xbf16>
    %c0_1 = arith.constant 0 : index
    %c0_2 = arith.constant 0 : index
    %1 = vector.load %arg3[%c0_1, %c0_2] : memref<128x512xbf16, #tpu.memory_space<vmem>>, vector<128x512xbf16>
    %cst = arith.constant dense<0.000000e+00> : vector<16x512xf32>
    %2 = tpu.matmul %0, %1, %cst {dimension_numbers = #tpu.dot_dimension_numbers<[1], [0], [0], [1], [0, 0, 1, 1], [], []>} : vector<16x128xbf16>, vector<128x512xbf16>, vector<16x512xf32> -> vector<16x512xf32>
    %c0_3 = arith.constant 0 : index
    %c0_4 = arith.constant 0 : index
    %3 = vector.load %arg4[%c0_3, %c0_4] : memref<1x512xf32, #tpu.memory_space<vmem>>, vector<1x512xf32>
    %4 = vector.broadcast %3 : vector<1x512xf32> to vector<16x512xf32>
    %5 = arith.addf %2, %4 : vector<16x512xf32>
    %cst_5 = arith.constant 0.000000e+00 : f32
    %6 = vector.broadcast %cst_5 : f32 to vector<16x512xf32>
    %7 = arith.maximumf %5, %6 : vector<16x512xf32>
    %8 = arith.truncf %7 : vector<16x512xf32> to vector<16x512xbf16>
    %c0_6 = arith.constant 0 : index
    %c0_7 = arith.constant 0 : index
    %9 = vector.load %arg5[%c0_6, %c0_7] : memref<512x128xbf16, #tpu.memory_space<vmem>>, vector<512x128xbf16>
    %cst_8 = arith.constant dense<0.000000e+00> : vector<16x128xf32>
    %10 = tpu.matmul %8, %9, %cst_8 {dimension_numbers = #tpu.dot_dimension_numbers<[1], [0], [0], [1], [0, 0, 1, 1], [], []>} : vector<16x512xbf16>, vector<512x128xbf16>, vector<16x128xf32> -> vector<16x128xf32>
    %c0_i32 = arith.constant 0 : i32
    %11 = arith.cmpi eq, %arg1, %c0_i32 : i32
    %12 = arith.extui %11 : i1 to i32
    %c0_i32_9 = arith.constant 0 : i32
    %13 = arith.cmpi ne, %12, %c0_i32_9 : i32
    scf.if %13 {
      %c0_12 = arith.constant 0 : index
      %c0_13 = arith.constant 0 : index
      %17 = vector.load %arg6[%c0_12, %c0_13] : memref<1x128xf32, #tpu.memory_space<vmem>>, vector<1x128xf32>
      %18 = vector.broadcast %17 : vector<1x128xf32> to vector<16x128xf32>
      %19 = arith.addf %10, %18 : vector<16x128xf32>
      %c0_14 = arith.constant 0 : index
      %c0_15 = arith.constant 0 : index
      %20 = vector.load %arg7[%c0_14, %c0_15] : memref<16x128xf32, #tpu.memory_space<vmem>>, vector<16x128xf32>
      tpu.vector_store %arg7[%c0_14, %c0_15], %19 {strides = array<i32>} : memref<16x128xf32, #tpu.memory_space<vmem>>, vector<16x128xf32>,
    } else {
    }
    %c0_i32_10 = arith.constant 0 : i32
    %14 = arith.cmpi sgt, %arg1, %c0_i32_10 : i32
    %15 = arith.extui %14 : i1 to i32
    %c0_i32_11 = arith.constant 0 : i32
    %16 = arith.cmpi ne, %15, %c0_i32_11 : i32
    scf.if %16 {
      %c0_12 = arith.constant 0 : index
      %c0_13 = arith.constant 0 : index
      %17 = vector.load %arg7[%c0_12, %c0_13] : memref<16x128xf32, #tpu.memory_space<vmem>>, vector<16x128xf32>
      %18 = arith.addf %17, %10 : vector<16x128xf32>
      %c0_14 = arith.constant 0 : index
      %c0_15 = arith.constant 0 : index
      %19 = vector.load %arg7[%c0_14, %c0_15] : memref<16x128xf32, #tpu.memory_space<vmem>>, vector<16x128xf32>
      tpu.vector_store %arg7[%c0_14, %c0_15], %18 {strides = array<i32>} : memref<16x128xf32, #tpu.memory_space<vmem>>, vector<16x128xf32>,
    } else {
    }
    return
  }
  func.func @transform_0(%arg0: i32, %arg1: i32) -> (i32, i32) {
    %c0_i32 = arith.constant 0 : i32
    %c0_i32_0 = arith.constant 0 : i32
    return %arg0, %c0_i32 : i32, i32
  }
  func.func @transform_1(%arg0: i32, %arg1: i32) -> (i32, i32) {
    %c0_i32 = arith.constant 0 : i32
    %c0_i32_0 = arith.constant 0 : i32
    return %c0_i32, %arg1 : i32, i32
  }
  func.func @transform_2(%arg0: i32, %arg1: i32) -> (i32, i32) {
    %c0_i32 = arith.constant 0 : i32
    %c0_i32_0 = arith.constant 0 : i32
    return %c0_i32, %arg1 : i32, i32
  }
  func.func @transform_3(%arg0: i32, %arg1: i32) -> (i32, i32) {
    %c0_i32 = arith.constant 0 : i32
    %c0_i32_0 = arith.constant 0 : i32
    return %arg1, %c0_i32 : i32, i32
  }
  func.func @transform_4(%arg0: i32, %arg1: i32) -> (i32, i32) {
    %c0_i32 = arith.constant 0 : i32
    %c0_i32_0 = arith.constant 0 : i32
    %c0_i32_1 = arith.constant 0 : i32
    return %c0_i32, %c0_i32_0 : i32, i32
  }
  func.func @transform_5(%arg0: i32, %arg1: i32) -> (i32, i32) {
    %c0_i32 = arith.constant 0 : i32
    %c0_i32_0 = arith.constant 0 : i32
    return %arg0, %c0_i32 : i32, i32
  }
}

</mosaic_0001>

<bundles_post_ra>
// kernel: tpu_custom_call.1
= control target key start
LH: loop header
LB: loop body
LE: loop exit
PB: predicated region body
PF: predicated region fallthrough
CT: control target
= control target key end

     0   :  { %10 = vsyncpa [#allocation3], 0  ;;  %s1148_s0 = inlined_call_operand.hbm [shape: bf16[16,128], index: 0, kind: input, shape index: {}]   ;;  %s1149_s1 = inlined_call_operand.hbm [shape: bf16[128,512], index: 1, kind: input, shape index: {}]   ;;  %s1150_s2 = inlined_call_operand.hbm [shape: f32[1,512], index: 2, kind: input, shape index: {}]   ;;  %s1151_s3 = inlined_call_operand.hbm [shape: bf16[512,128], index: 3, kind: input, shape index: {}]   ;;  %s1152_s4 = inlined_call_operand.vmem [shape: f32[1,128], index: 4, kind: input, shape index: {}]   ;;  %s1153_s5 = inlined_call_operand.hbm [shape: f32[16,128], index: 5, kind: output, shape index: {}]  }
   0x1   :  { %11 = vsyncpa [#allocation6], 0 }
   0x2   :  { %12 = vsyncpa [#allocation9], 0 }
   0x3   :  { %13 = vsyncpa [#allocation4], 0  ;;  %s1088_s18 = smov [#allocation5]  }
   0x4   :  { %s31_s19 = sshll.u32 %s1088_s18, 4  ;;  %s32_s19 = int_to_ptr.vmem [resolvable:$true] %s31_s19 }
   0x5   :  { %s988_s20 = scalar_lea.vmem %s32_s19, 4096  ;;  %p993_p1 = scmp.lt.s32.totalorder %s32_s19, %s32_s19 }
   0x6   :  { %p989_p0 = scmp.ne.s32.totalorder %s32_s19, %s988_s20  ;;  %p994_p2 = scmp.lt.s32.totalorder %s988_s20, %s988_s20 }
   0x8   :  { %p995_p3 = por %p994_p2, %p993_p1 }
   0xa   :  { %p996_p4 = pnand %p995_p3, %p989_p0 }
   0xc   :  { %999 = shalt.err (!%p996_p4)
}
   0xd   :  { %s1089_s21 = smov 256   ;;  %s1090_s22 = smov 16  }
   0xe   :  { %37 = dma.hbm_to_vmem [thread:$0]  %s1149_s1, 4096, %s32_s19, [#allocation6], %s1089_s21, %s1089_s21, %s1090_s22  }
   0xf   :  { %s1091_s25 = smov [#allocation2]  }
  0x10   :  { %s19_s26 = sshll.u32 %s1091_s25, 4  ;;  %s20_s26 = int_to_ptr.vmem [resolvable:$true] %s19_s26 }
  0x11   :  { %s1008_s27 = scalar_lea.vmem %s20_s26, 128  ;;  %p1013_p6 = scmp.lt.s32.totalorder %s20_s26, %s20_s26 }
  0x12   :  { %p1009_p5 = scmp.ne.s32.totalorder %s20_s26, %s1008_s27  ;;  %p1014_p7 = scmp.lt.s32.totalorder %s1008_s27, %s1008_s27 }
  0x14   :  { %p1015_p8 = por %p1014_p7, %p1013_p6 }
  0x16   :  { %p1016_p9 = pnand %p1015_p8, %p1009_p5 }
  0x18   :  { %1019 = shalt.err (!%p1016_p9)
}
  0x19   :  { %s1092_s28 = smov 64   ;;  %s1093_s29 = smov 4  }
  0x1a   :  { %25 = dma.hbm_to_vmem [thread:$0]  %s1148_s0, 128, %s20_s26, [#allocation3], %s1092_s28, %s1092_s28, %s1093_s29  }
  0x1b   :  { %s1094_s7 = smov [#allocation7]   ;;  %s1095_s9 = smov [#allocation8]  }
  0x1c   :  { %s44_s8 = sshll.u32 %s1094_s7, 4  ;;  %s53_s1 = sshll.u32 %s1095_s9, 4  ;;  %s45_s8 = int_to_ptr.vmem [resolvable:$true] %s44_s8  ;;  %s54_s1 = int_to_ptr.vmem [resolvable:$true] %s53_s1 }
  0x1d   :  { %s1028_s10 = scalar_lea.vmem %s45_s8, 64  ;;  %p1033_p11 = scmp.lt.s32.totalorder %s45_s8, %s45_s8 }
  0x1e   :  { %p1029_p10 = scmp.ne.s32.totalorder %s45_s8, %s1028_s10  ;;  %p1034_p12 = scmp.lt.s32.totalorder %s1028_s10, %s1028_s10 }
  0x20   :  { %p1035_p13 = por %p1034_p12, %p1033_p11 }
  0x22   :  { %p1036_p0 = pnand %p1035_p13, %p1029_p10 }
  0x24   :  { %1039 = shalt.err (!%p1036_p0)
}
  0x25   :  { %47 = dma.hbm_to_vmem [thread:$0]  %s1150_s2, 64, %s45_s8, [#allocation6]  }
  0x26   :  { %s1048_s13 = scalar_lea.vmem %s54_s1, 4096  ;;  %p1053_p2 = scmp.lt.s32.totalorder %s54_s1, %s54_s1 }
  0x27   :  { %p1049_p1 = scmp.ne.s32.totalorder %s54_s1, %s1048_s13  ;;  %p1054_p3 = scmp.lt.s32.totalorder %s1048_s13, %s1048_s13 }
  0x29   :  { %p1055_p4 = por %p1054_p3, %p1053_p2 }
  0x2b   :  { %p1056_p5 = pnand %p1055_p4, %p1049_p1 }
  0x2d   :  { %1059 = shalt.err (!%p1056_p5)
}
  0x2e   :  { %59 = dma.hbm_to_vmem [thread:$0]  %s1151_s3, 4096, %s54_s1, [#allocation9], %s1092_s28, %s1092_s28, %s1093_s29  }
  0x2f   :  { %1080 = dma.done.wait [#allocation3], 128  }
  0x30   :  { %1081 = vsyncadd [#allocation3], 4294967168 }
  0x31   :  { %1082 = dma.done.wait [#allocation6], 4160  }
  0x32   :  { %1083 = vsyncadd [#allocation6], 4294963136 }
  0x33   :  { %1084 = dma.done.wait [#allocation9], 4096  }
  0x34   :  { %1085 = vsyncadd [#allocation9], 4294963200  ;;  %v1096_v0 = vmov 0   ;;  %v899_v1 = vld [vmem:[#allocation5 + $0xe4] ss:$16 sps:$4 sm:$0xff]   ;;  %v948_v33 = vld [vmem:[#allocation8 + $0x78] sm:$0xff]  }
  0x35   :  { %329 = vmatprep.mubr.bf16.mxu0 %v1096_v0  ;;  %372 = vmatprep.mubr.bf16.mxu1 %v1096_v0  ;;  %v901_v2 = vld [vmem:[#allocation5 + $0xec] ss:$16 sps:$4 sm:$0xff]   ;;  %v903_v3 = vld [vmem:[#allocation5 + $0xe0] ss:$16 sps:$4 sm:$0xff]   ;;  %v904_v4 = vld [vmem:[#allocation5 + $0xe8] ss:$16 sps:$4 sm:$0xff]  }
  0x36   :  { %297 = vmatprep.subr.bf16.mxu0 %v899_v1  ;;  %340 = vmatprep.subr.bf16.mxu1 %v901_v2  ;;  %v905_v5 = vld [vmem:[#allocation5 + $0xc4] ss:$16 sps:$4 sm:$0xff]   ;;  %v907_v6 = vld [vmem:[#allocation5 + $0xcc] ss:$16 sps:$4 sm:$0xff]   ;;  %v909_v7 = vld [vmem:[#allocation5 + $0xc0] ss:$16 sps:$4 sm:$0xff]   ;;  %v111_v2 = vlaneseq }
  0x37   :  { %298 = vmatpush1.bf16.msra.mxu0 %v903_v3  ;;  %341 = vmatpush1.bf16.msra.mxu1 %v904_v4  ;;  %v910_v8 = vld [vmem:[#allocation5 + $0xc8] ss:$16 sps:$4 sm:$0xff]   ;;  %v911_v9 = vld [vmem:[#allocation5 + $0xa4] ss:$16 sps:$4 sm:$0xff]   ;;  %v913_v10 = vld [vmem:[#allocation5 + $0xac] ss:$16 sps:$4 sm:$0xff]  }
  0x38   :  { %299 = vmatprep.subr.bf16.mxu0 %v905_v5  ;;  %342 = vmatprep.subr.bf16.mxu1 %v907_v6  ;;  %v915_v11 = vld [vmem:[#allocation5 + $0xa0] ss:$16 sps:$4 sm:$0xff]   ;;  %v916_v12 = vld [vmem:[#allocation5 + $0xa8] ss:$16 sps:$4 sm:$0xff]   ;;  %v917_v13 = vld [vmem:[#allocation5 + $0x84] ss:$16 sps:$4 sm:$0xff]  }
  0x39   :  { %v919_v14 = vld [vmem:[#allocation5 + $0x8c] ss:$16 sps:$4 sm:$0xff]   ;;  %v921_v15 = vld [vmem:[#allocation5 + $0x80] ss:$16 sps:$4 sm:$0xff]   ;;  %v922_v16 = vld [vmem:[#allocation5 + $0x88] ss:$16 sps:$4 sm:$0xff]  }
  0x3a   :  { %v923_v17 = vld [vmem:[#allocation5 + $0x64] ss:$16 sps:$4 sm:$0xff]   ;;  %v925_v18 = vld [vmem:[#allocation5 + $0x6c] ss:$16 sps:$4 sm:$0xff]   ;;  %v927_v19 = vld [vmem:[#allocation5 + $0x60] ss:$16 sps:$4 sm:$0xff]  }
  0x3b   :  { %300 = vmatpush1.bf16.msra.mxu0 %v909_v7  ;;  %343 = vmatpush1.bf16.msra.mxu1 %v910_v8  ;;  %v928_v20 = vld [vmem:[#allocation5 + $0x68] ss:$16 sps:$4 sm:$0xff]   ;;  %v929_v21 = vld [vmem:[#allocation5 + $0x44] ss:$16 sps:$4 sm:$0xff]   ;;  %v931_v22 = vld [vmem:[#allocation5 + $0x4c] ss:$16 sps:$4 sm:$0xff]  }
  0x3c   :  { %301 = vmatprep.subr.bf16.mxu0 %v911_v9  ;;  %344 = vmatprep.subr.bf16.mxu1 %v913_v10  ;;  %v933_v23 = vld [vmem:[#allocation5 + $0x40] ss:$16 sps:$4 sm:$0xff]   ;;  %v934_v24 = vld [vmem:[#allocation5 + $0x48] ss:$16 sps:$4 sm:$0xff]   ;;  %v935_v25 = vld [vmem:[#allocation5 + $0x24] ss:$16 sps:$4 sm:$0xff]  }
  0x3d   :  { %v937_v26 = vld [vmem:[#allocation5 + $0x2c] ss:$16 sps:$4 sm:$0xff]   ;;  %v939_v27 = vld [vmem:[#allocation5 + $0x20] ss:$16 sps:$4 sm:$0xff]   ;;  %v940_v28 = vld [vmem:[#allocation5 + $0x28] ss:$16 sps:$4 sm:$0xff]  }
  0x3e   :  { %v941_v29 = vld [vmem:[#allocation5 + $0x4] ss:$16 sps:$4 sm:$0xff]   ;;  %v943_v30 = vld [vmem:[#allocation5 + $0xc] ss:$16 sps:$4 sm:$0xff]   ;;  %v945_v31 = vld [vmem:[#allocation5] ss:$16 sps:$4 sm:$0xff]  }
  0x3f   :  { %302 = vmatpush1.bf16.msra.mxu0 %v915_v11  ;;  %345 = vmatpush1.bf16.msra.mxu1 %v916_v12  ;;  %v946_v32 = vld [vmem:[#allocation5 + $0x8] ss:$16 sps:$4 sm:$0xff]   ;;  %v949_v35 = vld [vmem:[#allocation8 + $0xf8] sm:$0xff]   ;;  %v956_v42 = vld [vmem:[#allocation8 + $0x68] sm:$0xff]   ;;  %v112_v3 = vshrl.u32 %v111_v2, 7  ;;  %s1097_s15 = smov [#allocation10]  }
  0x40   :  { %303 = vmatprep.subr.bf16.mxu0 %v917_v13  ;;  %346 = vmatprep.subr.bf16.mxu1 %v919_v14  ;;  %v947_v34 = vld [vmem:[#allocation2] sm:$0xff]   ;;  %v957_v43 = vld [vmem:[#allocation8 + $0xe8] sm:$0xff]   ;;  %v960_v46 = vld [vmem:[#allocation8 + $0x60] sm:$0xff]   ;;  %s763_s16 = sshll.u32 %s1097_s15, 4  ;;  %s764_s16 = int_to_ptr.vmem [resolvable:$true] %s763_s16 }
  0x41   :  { %v950_v36 = vld [vmem:[#allocation8 + $0x38] sm:$0xff]   ;;  %v952_v38 = vld [vmem:[#allocation8 + $0x70] sm:$0xff]   ;;  %v958_v44 = vld [vmem:[#allocation8 + $0x28] sm:$0xff]   ;;  %v117_v4 = vsub.s32 1, %v112_v3  ;;  %v125_v5 = vsub.s32 3, %v112_v3  ;;  %v113_v6 = vsub.s32 0, %v112_v3  ;;  %p1065_p7 = scmp.lt.s32.totalorder %s764_s16, %s764_s16 }
  0x42   :  { %v951_v37 = vld [vmem:[#allocation8 + $0xb8] sm:$0xff]   ;;  %v953_v39 = vld [vmem:[#allocation8 + $0xf0] sm:$0xff]   ;;  %v959_v45 = vld [vmem:[#allocation8 + $0xa8] sm:$0xff]   ;;  %v121_v7 = vsub.s32 2, %v112_v3  ;;  %s1060_s17 = scalar_lea.vmem %s764_s16, 256 }
  0x43   :  { %304 = vmatpush1.bf16.msra.mxu0 %v921_v15  ;;  %347 = vmatpush1.bf16.msra.mxu1 %v922_v16  ;;  %v954_v40 = vld [vmem:[#allocation8 + $0x30] sm:$0xff]   ;;  %v961_v47 = vld [vmem:[#allocation8 + $0xe0] sm:$0xff]   ;;  %v964_v50 = vld [vmem:[#allocation8 + $0x58] sm:$0xff]   ;;  %p1061_p6 = scmp.ne.s32.totalorder %s764_s16, %s1060_s17  ;;  %p1066_p8 = scmp.lt.s32.totalorder %s1060_s17, %s1060_s17 }
  0x44   :  { %305 = vmatprep.subr.bf16.mxu0 %v923_v17  ;;  %348 = vmatprep.subr.bf16.mxu1 %v925_v18  ;;  %v955_v41 = vld [vmem:[#allocation8 + $0xb0] sm:$0xff]   ;;  %v962_v48 = vld [vmem:[#allocation8 + $0x20] sm:$0xff]   ;;  %v965_v51 = vld [vmem:[#allocation8 + $0xd8] sm:$0xff]  }
  0x45   :  { %v963_v49 = vld [vmem:[#allocation8 + $0xa0] sm:$0xff]   ;;  %v966_v52 = vld [vmem:[#allocation8 + $0x18] sm:$0xff]   ;;  %v968_v54 = vld [vmem:[#allocation8 + $0x50] sm:$0xff]   ;;  %p1067_p9 = por %p1066_p8, %p1065_p7 }
  0x46   :  { %v967_v53 = vld [vmem:[#allocation8 + $0x98] sm:$0xff]   ;;  %v969_v55 = vld [vmem:[#allocation8 + $0xd0] sm:$0xff]   ;;  %v972_v58 = vld [vmem:[#allocation8 + $0x48] sm:$0xff]  }
  0x47   :  { %306 = vmatpush1.bf16.msra.mxu0 %v927_v19  ;;  %349 = vmatpush1.bf16.msra.mxu1 %v928_v20  ;;  %v970_v56 = vld [vmem:[#allocation8 + $0x10] sm:$0xff]   ;;  %v973_v59 = vld [vmem:[#allocation8 + $0xc8] sm:$0xff]   ;;  %v976_v62 = vld [vmem:[#allocation8 + $0x40] sm:$0xff]   ;;  %p1068_p10 = pnand %p1067_p9, %p1061_p6 }
  0x48   :  { %307 = vmatprep.subr.bf16.mxu0 %v929_v21  ;;  %350 = vmatprep.subr.bf16.mxu1 %v931_v22  ;;  %v971_v57 = vld [vmem:[#allocation8 + $0x90] sm:$0xff]   ;;  %v974_v60 = vld [vmem:[#allocation8 + $0x8] sm:$0xff]   ;;  %v977_v63 = vld [vmem:[#allocation8 + $0xc0] sm:$0xff]  }
  0x49   :  { %v975_v61 = vld [vmem:[#allocation8 + $0x88] sm:$0xff]   ;;  %v978_v0 = vld [vmem:[#allocation8] sm:$0xff]   ;;  %v109_v8 = vld [vmem:[#allocation7] sm:$0xf] }
  0x4a   :  { %v979_v1 = vld [vmem:[#allocation8 + $0x80] sm:$0xff]   ;;  %v118_v11 = vrot.slane %v109_v8, %v117_v4  ;;  %v126_v12 = vrot.slane %v109_v8, %v125_v5  ;;  %v114_v13 = vrot.slane %v109_v8, %v113_v6  ;;  %v122_v14 = vrot.slane %v109_v8, %v121_v7 }
  0x4b   :  { %308 = vmatpush1.bf16.msra.mxu0 %v933_v23  ;;  %351 = vmatpush1.bf16.msra.mxu1 %v934_v24 }
  0x4c   :  { %309 = vmatprep.subr.bf16.mxu0 %v935_v25  ;;  %352 = vmatprep.subr.bf16.mxu1 %v937_v26 }
  0x4f   :  { %310 = vmatpush1.bf16.msra.mxu0 %v939_v27  ;;  %353 = vmatpush1.bf16.msra.mxu1 %v940_v28 }
  0x50   :  { %311 = vmatprep.subr.bf16.mxu0 %v941_v29  ;;  %354 = vmatprep.subr.bf16.mxu1 %v943_v30 }
  0x53   :  { %312 = vmatpush1.bf16.msra.mxu0 %v945_v31  ;;  %355 = vmatpush1.bf16.msra.mxu1 %v946_v32 }
  0x54   :  { %843 = vmatprep.subr.bf16.mxu0 %v948_v33  ;;  %865 = vmatprep.subr.bf16.mxu1 %v949_v35 }
  0x56   :  { %330 = vmatmul.mubr.bf16.vlgmr.msra.gmra.mxu0 %v947_v34  ;;  %373 = vmatmul.mubr.bf16.vlgmr.msra.gmra.mxu1 %v947_v34 }
  0x57   :  { %844 = vmatpush3.bf16.msra.mxu0 %v950_v36  ;;  %866 = vmatpush3.bf16.msra.mxu1 %v951_v37 }
  0x58   :  { %845 = vmatprep.subr.bf16.mxu0 %v952_v38  ;;  %867 = vmatprep.subr.bf16.mxu1 %v953_v39 }
  0x5b   :  { %846 = vmatpush3.bf16.msra.mxu0 %v954_v40  ;;  %868 = vmatpush3.bf16.msra.mxu1 %v955_v41 }
  0x5c   :  { %847 = vmatprep.subr.bf16.mxu0 %v956_v42  ;;  %869 = vmatprep.subr.bf16.mxu1 %v957_v43 }
  0x5f   :  { %848 = vmatpush3.bf16.msra.mxu0 %v958_v44  ;;  %870 = vmatpush3.bf16.msra.mxu1 %v959_v45 }
  0x60   :  { %849 = vmatprep.subr.bf16.mxu0 %v960_v46  ;;  %871 = vmatprep.subr.bf16.mxu1 %v961_v47  ;;  %v842_v47 = vld [vmem:[%s1152_s4] ss:$0 sm:$0xff] }
  0x63   :  { %850 = vmatpush3.bf16.msra.mxu0 %v962_v48  ;;  %872 = vmatpush3.bf16.msra.mxu1 %v963_v49 }
  0x64   :  { %851 = vmatprep.subr.bf16.mxu0 %v964_v50  ;;  %873 = vmatprep.subr.bf16.mxu1 %v965_v51 }
  0x67   :  { %852 = vmatpush3.bf16.msra.mxu0 %v966_v52  ;;  %874 = vmatpush3.bf16.msra.mxu1 %v967_v53 }
  0x68   :  { %853 = vmatprep.subr.bf16.mxu0 %v968_v54  ;;  %875 = vmatprep.subr.bf16.mxu1 %v969_v55 }
  0x6b   :  { %854 = vmatpush3.bf16.msra.mxu0 %v970_v56  ;;  %876 = vmatpush3.bf16.msra.mxu1 %v971_v57 }
  0x6c   :  { %855 = vmatprep.subr.bf16.mxu0 %v972_v58  ;;  %877 = vmatprep.subr.bf16.mxu1 %v973_v59 }
  0x6f   :  { %856 = vmatpush3.bf16.msra.mxu0 %v974_v60  ;;  %878 = vmatpush3.bf16.msra.mxu1 %v975_v61 }
  0x70   :  { %857 = vmatprep.subr.bf16.mxu0 %v976_v62  ;;  %879 = vmatprep.subr.bf16.mxu1 %v977_v63 }
  0x73   :  { %858 = vmatpush3.bf16.msra.mxu0 %v978_v0  ;;  %880 = vmatpush3.bf16.msra.mxu1 %v979_v1 }
 0x116   :  { %v331_v9 = vpop.f32.mrf.mxu0  ;;  %v374_v10 = vpop.f32.mrf.mxu1 }
 0x117   :  { %v332_v23 = vadd.f32 %v331_v9, %v114_v13  ;;  %v375_v24 = vadd.f32 %v374_v10, %v122_v14 }
 0x118   :  { %v333_v15 = vpop.f32.mrf.mxu0  ;;  %v376_v16 = vpop.f32.mrf.mxu1 }
 0x119   :  { %v334_v19 = vadd.f32 %v333_v15, %v118_v11  ;;  %v377_v20 = vadd.f32 %v376_v16, %v126_v12  ;;  %v383_v35 = vmax.f32 %v332_v23, 0.0  ;;  %v385_v36 = vmax.f32 %v375_v24, 0.0 }
 0x11a   :  { %v335_v17 = vpop.f32.mrf.mxu0  ;;  %v378_v18 = vpop.f32.mrf.mxu1 }
 0x11b   :  { %v336_v21 = vadd.f32 %v335_v17, %v114_v13  ;;  %v379_v22 = vadd.f32 %v378_v18, %v122_v14  ;;  %v384_v31 = vmax.f32 %v334_v19, 0.0  ;;  %v386_v32 = vmax.f32 %v377_v20, 0.0 }
 0x11c   :  { %v337_v25 = vpop.f32.mrf.mxu0  ;;  %v380_v26 = vpop.f32.mrf.mxu1 }
 0x11d   :  { %v338_v27 = vadd.f32 %v337_v25, %v118_v11  ;;  %v381_v28 = vadd.f32 %v380_v26, %v126_v12  ;;  %v387_v29 = vmax.f32 %v336_v21, 0.0  ;;  %v389_v30 = vmax.f32 %v379_v22, 0.0 }
 0x11f   :  { %v388_v33 = vmax.f32 %v338_v27, 0.0  ;;  %v390_v34 = vmax.f32 %v381_v28, 0.0  ;;  %v391_v39 = vpack.c.bf16 %v387_v29, %v383_v35  ;;  %v393_v40 = vpack.c.bf16 %v389_v30, %v385_v36 }
 0x121   :  { %v392_v37 = vpack.c.bf16 %v388_v33, %v384_v31  ;;  %v394_v38 = vpack.c.bf16 %v390_v34, %v386_v32 }
 0x123   :  { %683 = vmatprep.mubr.bf16.mxu0 %v392_v37  ;;  %724 = vmatprep.mubr.bf16.mxu1 %v394_v38 }
 0x124   :  { %684 = vmatmul.mubr.bf16.vlgmr.msra.gmra.mxu0 %v391_v39  ;;  %725 = vmatmul.mubr.bf16.vlgmr.msra.gmra.mxu1 %v393_v40 }
 0x1e4   :  { %v859_v41 = vpop.f32.mrf.mxu0  ;;  %v881_v42 = vpop.f32.mrf.mxu1 }
 0x1e6   :  { %v860_v43 = vpop.f32.mrf.mxu0  ;;  %v882_v44 = vpop.f32.mrf.mxu1 }
 0x1e7   :  { %v861_v45 = vadd.f32 %v860_v43, %v859_v41  ;;  %v883_v46 = vadd.f32 %v882_v44, %v881_v42 }
 0x1e8   :  { %v862_v48 = vpop.f32.mrf.mxu0  ;;  %v884_v49 = vpop.f32.mrf.mxu1 }
 0x1e9   :  { %v727_v50 = vadd.f32 %v883_v46, %v861_v45 }
 0x1ea   :  { %v863_v51 = vpop.f32.mrf.mxu0  ;;  %v885_v52 = vpop.f32.mrf.mxu1 }
 0x1eb   :  { %v744_v53 = vadd.f32 %v842_v47, %v727_v50  ;;  %v864_v54 = vadd.f32 %v863_v51, %v862_v48  ;;  %v886_v55 = vadd.f32 %v885_v52, %v884_v49 }
 0x1ed   :  { %746 = vst [vmem:[#allocation10] sm:$0xff] %v744_v53  ;;  %v730_v56 = vadd.f32 %v886_v55, %v864_v54 }
 0x1ef   :  { %v745_v57 = vadd.f32 %v842_v47, %v730_v56 }
 0x1f1   :  { %747 = vst [vmem:[#allocation10 + $0x8] sm:$0xff] %v745_v57 }
 0x1f2   :  { %1071 = shalt.err (!%p1068_p10)
}
 0x1f3   :  { %s1098_s4 = smov 128   ;;  %s1099_s18 = smov 8  }
 0x1f4   :  { %769 = dma.vmem_to_hbm [thread:$0]  %s764_s16, 256, %s1153_s5, [#allocation4], %s1098_s4, %s1098_s4, %s1099_s18  }
 0x1f5   :  { %1086 = dma.done.wait [#allocation4], 256  }
 0x1f6   :  { %1087 = vsyncadd [#allocation4], 4294967040 }
 0x1f7   :  { %773 = vsyncpa [#allocation3], 1 }
 0x1f8   :  { %774 = vsyncpa [#allocation6], 1 }
 0x1f9   :  { %775 = vsyncpa [#allocation9], 1 }
 0x1fa   :  { %776 = vsyncpa [#allocation4], 1 }

</bundles_post_ra>
